<compile_context>
chip_gen: v7x
topology: tpu7x:2x2x1
jax: 0.10.0
libtpu: 0.0.40
codegen_flags: <defaults>
</compile_context>

<pallas_src>
import jax
import jax.numpy as jnp
import numpy as np
from jax.experimental import pallas as pl
from jax.experimental.pallas import tpu as pltpu


_NEG_BIG = -1e30  # finite "-inf" used to mask padded spatial lanes


def _make_kernel(C, HW, HW_pad, use_mxu):
    need_mask = HW_pad != HW

    def kernel(w_ref, x_ref, o_ref):
        # w_ref: (1, C) f32 VMEM; x_ref / o_ref: (Bb, C, HW_pad) VMEM
        x = x_ref[...]
        xf = x.astype(jnp.float32)
        w = w_ref[...]                                       # (1, C)

        # --- score: 1x1 conv over channels -> (Bb, 1, HW_pad) ---
        if use_mxu:
            s = jnp.einsum("oc,bcs->bos", w, xf,
                           preferred_element_type=jnp.float32)
        else:
            # tiny C: VPU multiply + sublane reduce, skip MXU push/pop latency
            s = jnp.sum(w.reshape(1, C, 1) * xf, axis=1, keepdims=True)

        if need_mask:
            lane = jax.lax.broadcasted_iota(jnp.int32, s.shape, dimension=2)
            s = jnp.where(lane < HW, s, _NEG_BIG)

        # --- numerically-stable softmax over the spatial (lane) axis ---
        m = jnp.max(s, axis=-1, keepdims=True)
        e = jnp.exp(s - m)
        p = e / jnp.sum(e, axis=-1, keepdims=True)           # (Bb, 1, HW_pad)

        # --- context: attention-weighted spatial sum -> (Bb, C, 1) ---
        ctx = jnp.sum(xf * p, axis=-1, keepdims=True)

        # --- sigmoid gate, broadcast multiply, explicit output cast ---
        o_ref[...] = (jax.nn.sigmoid(ctx) * xf).astype(o_ref.dtype)

    return kernel


def _choose_block_batch(B, per_batch_bytes, target_bytes=1 << 20):
    """Largest divisor of B whose block stays <= target_bytes, keeping >= 2 grid
    steps when B >= 2 so both v7x TensorCores have work."""
    best = 1
    for bb in range(1, B + 1):
        if B % bb:
            continue
        if bb * per_batch_bytes > target_bytes:
            break
        if B >= 2 and B // bb < 2:
            continue
        best = bb
    return best


def attention_gc_forward(x, weight, bias=None):
    """x: (B, C, H, W); weight: (1, C, 1, 1); bias: (1,) or None.

    `bias` is accepted for API parity but intentionally unused: it shifts the
    pre-softmax score by a scalar and softmax is shift-invariant, so it cannot
    change the module output.
    """
    del bias
    B, C, H, W = x.shape
    HW = H * W
    HW_pad = ((HW + 127) // 128) * 128           # lane-dense (multiple-of-128) last dim

    x_flat = x.reshape(B, C, HW)
    if HW_pad != HW:
        x_flat = jnp.pad(x_flat, ((0, 0), (0, 0), (0, HW_pad - HW)))
    w2d = weight.reshape(1, C).astype(jnp.float32)

    itemsize = jnp.dtype(x.dtype).itemsize
    per_batch_bytes = C * HW_pad * itemsize
    Bb = _choose_block_batch(B, per_batch_bytes)
    grid = (B // Bb,)

    # VMEM budget: x + out blocks, double-buffered, plus the tiny weight tile.
    block_bytes = Bb * per_batch_bytes
    vmem_needed = 2 * 2 * block_bytes + 2 * C * 4
    if vmem_needed > (48 << 20):
        # TODO(synk): add a two-phase HW-tiled online-softmax path for feature maps too
        # large to hold a whole (Bb, C, HW) block under v7x's 64 MiB VMEM.
        raise NotImplementedError(
            f"(C, HW) block needs ~{vmem_needed >> 20} MiB VMEM; HW-tiled path not implemented")
    vmem_limit = int(min(max(vmem_needed + (4 << 20), 32 << 20), 48 << 20))

    kernel = _make_kernel(C, HW, HW_pad, use_mxu=(C >= 32))

    out_flat = pl.pallas_call(
        kernel,
        out_shape=jax.ShapeDtypeStruct((B, C, HW_pad), x.dtype),
        grid_spec=pltpu.PrefetchScalarGridSpec(
            num_scalar_prefetch=0,
            grid=grid,
            in_specs=[
                pl.BlockSpec((1, C), lambda b: (0, 0)),                 # conv weight
                pl.BlockSpec((Bb, C, HW_pad), lambda b: (b, 0, 0)),     # x tile(s)
            ],
            out_specs=pl.BlockSpec((Bb, C, HW_pad), lambda b: (b, 0, 0)),
        ),
        compiler_params=pltpu.CompilerParams(
            dimension_semantics=("parallel",),
            vmem_limit_bytes=vmem_limit,
        ),
    )(w2d, x_flat)

    return out_flat[:, :, :HW].reshape(B, C, H, W)


def attention_gc_reference(x, weight, bias):
    """Plain-JAX reference mirroring the PyTorch module (bias included for fidelity)."""
    B, C, H, W = x.shape
    HW = H * W
    w2d = weight.reshape(1, C)
    s = jnp.einsum("oc,bchw->bohw", w2d, x) + bias.reshape(1, 1, 1, 1)   # (B,1,H,W)
    p = jax.nn.softmax(s.reshape(B, 1, HW), axis=2)                       # (B,1,HW)
    ctx = jnp.einsum("bcs,bos->bc", x.reshape(B, C, HW), p)               # (B,C)
    return jax.nn.sigmoid(ctx).reshape(B, C, 1, 1) * x


if __name__ == "__main__":
    key = jax.random.PRNGKey(0)
    kx, kw, kb = jax.random.split(key, 3)

    B, C, H, W = 2, 4, 16, 16
    x = jax.random.normal(kx, (B, C, H, W), dtype=jnp.float32)

    # Conv2d(C -> 1, kernel_size=1) parameter shapes.
    weight = jax.random.normal(kw, (1, C, 1, 1), dtype=jnp.float32) * 0.1
    bias = jax.random.normal(kb, (1,), dtype=jnp.float32) * 0.1

    out = attention_gc_forward(x, weight, bias)
    out = jax.block_until_ready(out)

    ref = attention_gc_reference(x, weight, bias)
    np.testing.assert_allclose(np.asarray(out), np.asarray(ref), rtol=1e-5, atol=1e-5)

    print("KERNEL_OK")
</pallas_src>

<mosaic_0001>
module attributes {stable_mosaic.version = 11 : i64} {
  func.func @kernel(%arg0: i32, %arg1: memref<1x4xf32, #tpu.memory_space<vmem>>, %arg2: memref<1x4x256xf32, #tpu.memory_space<vmem>>, %arg3: memref<1x4x256xf32, #tpu.memory_space<vmem>>) attributes {dimension_semantics = [#tpu.dimension_semantics<parallel>], iteration_bounds = array<i64: 2>, scalar_prefetch = 0 : i64, scratch_operands = 0 : i64, tpu.core_type = #tpu.core_type<tc>, window_params = [{pipeline_mode = #tpu.pipeline_mode<synchronous>, transform_indices = @transform_0, window_bounds = array<i64: 1, 4>}, {transform_indices = @transform_1, window_bounds = array<i64: 1, 4, 256>}, {transform_indices = @transform_2, window_bounds = array<i64: 1, 4, 256>}]} {
    %c0 = arith.constant 0 : index
    %c0_0 = arith.constant 0 : index
    %c0_1 = arith.constant 0 : index
    %0 = vector.load %arg2[%c0, %c0_0, %c0_1] : memref<1x4x256xf32, #tpu.memory_space<vmem>>, vector<1x4x256xf32>
    %c0_2 = arith.constant 0 : index
    %c0_3 = arith.constant 0 : index
    %1 = vector.load %arg1[%c0_2, %c0_3] : memref<1x4xf32, #tpu.memory_space<vmem>>, vector<1x4xf32>
    %2 = vector.shape_cast %1 : vector<1x4xf32> to vector<1x4x1xf32>
    %3 = vector.broadcast %2 : vector<1x4x1xf32> to vector<1x4x256xf32>
    %4 = arith.mulf %3, %0 : vector<1x4x256xf32>
    %cst = arith.constant dense<0.000000e+00> : vector<1x256xf32>
    %5 = vector.multi_reduction <add>, %4, %cst [1] : vector<1x4x256xf32> to vector<1x256xf32>
    %6 = vector.shape_cast %5 : vector<1x256xf32> to vector<1x1x256xf32>
    %cst_4 = arith.constant dense<0xFF800000> : vector<1x1xf32>
    %7 = vector.multi_reduction <maximumf>, %6, %cst_4 [2] : vector<1x1x256xf32> to vector<1x1xf32>
    %8 = vector.shape_cast %7 : vector<1x1xf32> to vector<1x1x1xf32>
    %9 = vector.broadcast %8 : vector<1x1x1xf32> to vector<1x1x256xf32>
    %10 = arith.subf %6, %9 : vector<1x1x256xf32>
    %11 = math.exp %10 : vector<1x1x256xf32>
    %cst_5 = arith.constant dense<0.000000e+00> : vector<1x1xf32>
    %12 = vector.multi_reduction <add>, %11, %cst_5 [2] : vector<1x1x256xf32> to vector<1x1xf32>
    %13 = vector.shape_cast %12 : vector<1x1xf32> to vector<1x1x1xf32>
    %14 = vector.broadcast %13 : vector<1x1x1xf32> to vector<1x1x256xf32>
    %15 = arith.divf %11, %14 : vector<1x1x256xf32>
    %16 = vector.broadcast %15 : vector<1x1x256xf32> to vector<1x4x256xf32>
    %17 = arith.mulf %0, %16 : vector<1x4x256xf32>
    %cst_6 = arith.constant dense<0.000000e+00> : vector<1x4xf32>
    %18 = vector.multi_reduction <add>, %17, %cst_6 [2] : vector<1x4x256xf32> to vector<1x4xf32>
    %19 = vector.shape_cast %18 : vector<1x4xf32> to vector<1x4x1xf32>
    %20 = arith.negf %19 : vector<1x4x1xf32>
    %21 = math.exp %20 : vector<1x4x1xf32>
    %cst_7 = arith.constant 1.000000e+00 : f32
    %22 = vector.broadcast %cst_7 : f32 to vector<1x4x1xf32>
    %23 = arith.addf %22, %21 : vector<1x4x1xf32>
    %24 = arith.divf %22, %23 : vector<1x4x1xf32>
    %25 = vector.broadcast %24 : vector<1x4x1xf32> to vector<1x4x256xf32>
    %26 = arith.mulf %25, %0 : vector<1x4x256xf32>
    %c0_8 = arith.constant 0 : index
    %c0_9 = arith.constant 0 : index
    %c0_10 = arith.constant 0 : index
    %27 = vector.load %arg3[%c0_8, %c0_9, %c0_10] : memref<1x4x256xf32, #tpu.memory_space<vmem>>, vector<1x4x256xf32>
    tpu.vector_store %arg3[%c0_8, %c0_9, %c0_10], %26 {strides = array<i32>} : memref<1x4x256xf32, #tpu.memory_space<vmem>>, vector<1x4x256xf32>,
    return
  }
  func.func @transform_0(%arg0: i32) -> (i32, i32) {
    %c0_i32 = arith.constant 0 : i32
    %c0_i32_0 = arith.constant 0 : i32
    %c0_i32_1 = arith.constant 0 : i32
    return %c0_i32, %c0_i32_0 : i32, i32
  }
  func.func @transform_1(%arg0: i32) -> (i32, i32, i32) {
    %c0_i32 = arith.constant 0 : i32
    %c0_i32_0 = arith.constant 0 : i32
    %c0_i32_1 = arith.constant 0 : i32
    return %arg0, %c0_i32, %c0_i32_0 : i32, i32, i32
  }
  func.func @transform_2(%arg0: i32) -> (i32, i32, i32) {
    %c0_i32 = arith.constant 0 : i32
    %c0_i32_0 = arith.constant 0 : i32
    %c0_i32_1 = arith.constant 0 : i32
    return %arg0, %c0_i32, %c0_i32_0 : i32, i32, i32
  }
}

</mosaic_0001>

<bundles_post_ra>
// kernel: tpu_custom_call.1
= control target key start
LH: loop header
LB: loop body
LE: loop exit
PB: predicated region body
PF: predicated region fallthrough
CT: control target
= control target key end

     0   :  { %7 = vsyncpa [#allocation3], 0  ;;  %s785_s0 = inlined_call_operand.hbm [shape: f32[1,4], index: 0, kind: input, shape index: {}]   ;;  %s786_s1 = inlined_call_operand.hbm [shape: f32[2,4,256], index: 1, kind: input, shape index: {}]   ;;  %s787_s2 = inlined_call_operand.hbm [shape: f32[2,4,256], index: 2, kind: output, shape index: {}]  }
   0x1   :  { %8 = vsyncpa [#allocation6], 0 }
   0x2   :  { %10 = vsyncpa [#allocation6 + $0x1], 0 }
   0x3   :  { %11 = vsyncpa [#allocation4], 0 }
   0x4   :  { %13 = vsyncpa [#allocation4 + $0x1], 0  ;;  %s576_s9 = smov 0   ;;  %s578_s10 = smov 0  }
   0x5   :  { %s580_s11 = smov 0   ;;  %s582_s12 = smov 0  }
   0x6 LB: > { %s597_s13 = sadd.s32 4294967295, %s556_s12   ;;  %s340_s14 = sadd.s32 4294967294, %s556_s12   ;;  %s556_s12 = sphi %s582_s12, %s811_s12   ;;  %s552_s11 = sphi %s580_s11, %s810_s11   ;;  %s548_s10 = sphi %s578_s10, %s809_s10   ;;  %s544_s9 = sphi %s576_s9, %s808_s9  }
   0x7   : > { %p60_p0 = scmp.ne.s32.totalorder %s548_s10, %s544_s9  ;;  %p788_p1 = scmp.eq.s32.totalorder %s597_s13, 0 }
   0x8   : > { %p90_p3 = scmp.eq.s32.totalorder %s340_s14, 1  ;;  %p341_p5 = scmp.ge.s32.totalorder %s556_s12, 1 }
   0x9   : > { %p606_p4 = por %p788_p1, %p60_p0  ;;  %p97_p7 = scmp.lt.s32.totalorder %s556_s12, 3 }
   0xa   : > { %p611_p6 = por %p90_p3, %p60_p0  ;;  %s558_s18 = smov [#allocation2]  }
   0xb   : > { %s791_s15 = scalar_select %p606_p4, 1, 0 }
   0xc   : > { %s792_s16 = scalar_select %p611_p6, 1, 0 }
   0xd   : > { %p616_p8 = pnand %p341_p5, %p97_p7  ;;  %s110_s19 = sshll.u32 %s558_s18, 4  ;;  %s111_s19 = int_to_ptr.vmem [resolvable:$true] %s110_s19 }
   0xe   : > { %s624_s20 = sadd.s32 1, %s556_s12   ;;  %s47_s24 = sadd.s32 1, %s552_s11 }
   0xf   : > { %s793_s17 = scalar_select %p616_p8, 1, 0 }
  0x10   : > { %p368_p10 = pneg %p616_p8  ;;  %s44_s22 = ssub.s32 %s556_s12, %s624_s20 }
  0x11   : > { %p634_p12 = scmp.eq.s32.totalorder %s44_s22, 0  ;;  %s428_s27 = scalar_lea.hbm %s785_s0, 16 }
  0x12   : > { %p628_p11 = pnand %p368_p10, %p788_p1  ;;  %p429_p0 = scmp.ne.s32.totalorder %s785_s0, %s428_s27 }
  0x13   : > { %s795_s23 = scalar_select %p634_p12, 1, 0 }
  0x14   : > { %p430_p3 = pneg %p628_p11  ;;  %p435_p10 = scmp.lt.u32.totalorder %s428_s27, %s785_s0 }
  0x16   : > { %p431_p5 = pnand %p430_p3, %p429_p0 }
  0x18   : > { %p432_p7 = pneg %p431_p5 }
  0x1a   : > { %p437_p9 = pnand %p435_p10, %p432_p7 }
  0x1c   : > { %440 = shalt.err (!%p437_p9)
}
  0x1d   : > { %s441_s4 = scalar_lea.vmem %s111_s19, 16  ;;  %s448_s5 = scalar_lea.vmem %s111_s19, 32 }
  0x1e   : > { %p442_p1 = scmp.ne.s32.totalorder %s111_s19, %s441_s4  ;;  %p449_p6 = scmp.lt.s32.totalorder %s111_s19, %s111_s19 }
  0x1f   : > { %p450_p4 = scmp.lt.s32.totalorder %s448_s5, %s441_s4 }
  0x20   : > { %p444_p2 = pnand %p442_p1, %p430_p3 }
  0x21   : > { %p451_p8 = por %p450_p4, %p449_p6 }
  0x22   : > { %p445_p13 = pneg %p444_p2 }
  0x24   : > { %p452_p12 = pnand %p451_p8, %p445_p13 }
  0x26   : > { %455 = shalt.err (!%p452_p12)
}
  0x27   : > { %371 = dma.hbm_to_vmem [thread:$0]  (!%p628_p11), %s785_s0, 16, %s111_s19, [#allocation3]  }
  0x28   : > { %p796_p1 = scmp.ne.s32.totalorder %s795_s23, 0  ;;  %p55_p2 = scmp.eq.s32.totalorder %s556_s12, 0 }
  0x29   : > { %p797_p4 = scmp.ne.s32.totalorder %s552_s11, %s548_s10  ;;  %p798_p6 = scmp.eq.s32.totalorder %s597_s13, 1 }
  0x2a   : > { %s660_s8 = scalar_select %p796_p1, %s552_s11, %s47_s24  }
  0x2b   : > { %p668_p8 = por %p798_p6, %p797_p4  ;;  %p381_p9 = scmp.lt.s32.totalorder %s556_s12, 2 }
  0x2c   : > { %s121_s18 = sand.u32 1, %s552_s11   ;;  %p800_p12 = pmov %p797_p4 }
  0x2d   : > { %s344_s21 = sshll.u32 %s121_s18, 3  ;;  %s358_s22 = sshll.u32 %s556_s12, 7 }
  0x2e   : > { %p56_p13 = por %p55_p2, %p800_p12  ;;  %s681_s19 = scalar_lea.hbm %s786_s1, %s358_s22 }
  0x2f   : > { %s125_s23 = scalar_lea.vmem [#allocation5], %s344_s21  ;;  %s122_s28 = scalar_lea.sflag [#allocation6], %s121_s18 }
  0x30   : > { %s133_s24 = sshll.u32 %s125_s23, 4  ;;  %p683_p11 = pnand %p381_p9, %p56_p13  ;;  %s687_s24 = int_to_ptr.vmem [resolvable:$true] %s133_s24 }
  0x31   : > { %s456_s29 = scalar_lea.hbm %s681_s19, 128  ;;  %s461_s4 = scalar_lea.hbm %s786_s1, 256 }
  0x32   : > { %p457_p0 = scmp.ne.s32.totalorder %s681_s19, %s456_s29  ;;  %p458_p3 = pneg %p683_p11 }
  0x33   : > { %p462_p10 = scmp.lt.u32.totalorder %s681_s19, %s786_s1  ;;  %p463_p1 = scmp.lt.u32.totalorder %s461_s4, %s456_s29 }
  0x34   : > { %p459_p5 = pnand %p458_p3, %p457_p0  ;;  %p465_p4 = scmp.lt.u32.totalorder %s456_s29, %s681_s19 }
  0x35   : > { %p464_p2 = por %p463_p1, %p462_p10 }
  0x36   : > { %p460_p7 = pneg %p459_p5 }
  0x37   : > { %p466_p6 = por %p465_p4, %p464_p2 }
  0x39   : > { %p467_p9 = pnand %p466_p6, %p460_p7 }
  0x3b   : > { %470 = shalt.err (!%p467_p9)
}
  0x3c   : > { %s471_s7 = scalar_lea.vmem %s687_s24, 128  ;;  %s559_s18 = smov [#allocation5]  }
  0x3d   : > { %p472_p12 = scmp.ne.s32.totalorder %s687_s24, %s471_s7  ;;  %s476_s21 = sshll.u32 %s559_s18, 4  ;;  %s477_s21 = int_to_ptr.vmem [resolvable:$false] %s476_s21 }
  0x3e   : > { %s478_s22 = scalar_lea.vmem %s477_s21, 256  ;;  %p479_p5 = scmp.lt.s32.totalorder %s687_s24, %s477_s21 }
  0x3f   : > { %p474_p13 = pnand %p472_p12, %p458_p3  ;;  %p480_p10 = scmp.lt.s32.totalorder %s478_s22, %s471_s7 }
  0x41   : > { %p475_p0 = pneg %p474_p13  ;;  %p481_p1 = por %p480_p10, %p479_p5 }
  0x43   : > { %p482_p2 = pnand %p481_p1, %p475_p0 }
  0x45   : > { %485 = shalt.err (!%p482_p2)
}
  0x46   : > { %375 = dma.hbm_to_vmem [thread:$0]  (!%p683_p11), %s681_s19, 128, %s687_s24, %s122_s28  }
  0x47   : > { %p802_p7 = scmp.ne.s32.totalorder %s793_s17, 0 }
  0x48   : > { %p803_p3 = scmp.eq.s32.totalorder (!%p802_p7), %s597_s13, 0 }
  0x49   : > { %142 = sbr.rel (%p802_p7) target bundleno = 728 (0x2d8), region = 28 }
  0x50   : > { %531 = dma.done.wait (%p803_p3), [#allocation3], 16   ;;  %p804_p4 = pmov %p803_p3 }
  0x51   : > { %s721_s25 = sand.u32 1, %s548_s10   ;;  %p805_p11 = scmp.ne.s32.totalorder %s791_s15, 0 }
  0x52   : > { %533 = vsyncadd (%p804_p4), [#allocation3], 4294967280  ;;  %s349_s26 = sshll.u32 %s721_s25, 3  ;;  %s149_s23 = scalar_lea.sflag [#allocation6], %s721_s25 }
  0x53   : > { %s152_s19 = scalar_lea.vmem [#allocation5], %s349_s26 }
  0x54   : > { %535 = dma.done.wait (%p805_p11), %s149_s23, 128  }
  0x55   : > { %537 = vsyncadd (%p805_p11), %s149_s23, 4294967168  ;;  %v351_v0 = vld [vmem:[#allocation2] ss:$0 sm:$0xff]  ;;  %v173_v1 = vld [vmem:[%s152_s19] sm:$0xff]  ;;  %vm187_vm0 = vcmask 1043456   ;;  %s359_s15 = sshll.u32 %s597_s13, 7 }
  0x56   : > { %180 = vbcast.lane.b32.xlu0 %v351_v0, 256  ;;  %v183_v2 = vcombine.high %v173_v1, %v173_v1  ;;  %s172_s17 = scalar_lea.vmem [#allocation7], %s349_s26  ;;  %s741_s29 = scalar_lea.hbm %s787_s2, %s359_s15 }
  0x57   : > { %s258_s24 = sshll.u32 %s172_s17, 4  ;;  %s244_s30 = scalar_lea.sflag [#allocation4], %s721_s25  ;;  %s743_s24 = int_to_ptr.vmem [resolvable:$true] %s258_s24 }
  0x58   : > { %s486_s3 = scalar_lea.vmem %s743_s24, 128  ;;  %s560_s13 = smov [#allocation7]  }
  0x59   : > { %p487_p6 = scmp.ne.s32.totalorder %s743_s24, %s486_s3  ;;  %s490_s4 = sshll.u32 %s560_s13, 4  ;;  %s491_s4 = int_to_ptr.vmem [resolvable:$false] %s490_s4 }
  0x5a   : > { %s492_s5 = scalar_lea.vmem %s491_s4, 256  ;;  %p493_p13 = scmp.lt.s32.totalorder %s743_s24, %s491_s4 }
  0x5b   : > { %p488_p9 = pnand %p487_p6, %p668_p8  ;;  %p494_p0 = scmp.lt.s32.totalorder %s492_s5, %s486_s3 }
  0x5d   : > { %p489_p12 = pneg %p488_p9  ;;  %p495_p5 = por %p494_p0, %p493_p13 }
  0x5f   : > { %p496_p10 = pnand %p495_p5, %p489_p12 }
  0xc8   : > { %v181_v3 = vpop.permute.xlu0 %180 }
  0xc9   : > { %v185_v4 = vmul.f32 %v181_v3, %v173_v1  ;;  %v186_v5 = vmul.f32 %v183_v2, %v181_v3 }
  0xcb   : > { %v188_v6 = vsel %vm187_vm0, %v185_v4, 0.0  ;;  %v195_v7 = vsel %vm187_vm0, %v186_v5, 0.0 }
  0xcc   : > { %v189_v8 = vrot.slane %v188_v6, 4  ;;  %v196_v9 = vrot.slane %v195_v7, 4 }
  0xce   : > { %v190_v10 = vadd.f32 %v189_v8, %v188_v6  ;;  %v197_v11 = vadd.f32 %v196_v9, %v195_v7 }
  0xd0   : > { %v191_v12 = vrot.slane %v190_v10, 2  ;;  %v198_v13 = vrot.slane %v197_v11, 2 }
  0xd2   : > { %v192_v14 = vadd.f32 %v191_v12, %v190_v10  ;;  %v199_v15 = vadd.f32 %v198_v13, %v197_v11 }
  0xd4   : > { %v193_v16 = vrot.slane %v192_v14, 1  ;;  %v200_v17 = vrot.slane %v199_v15, 1 }
  0xd6   : > { %v194_v18 = vadd.f32 %v193_v16, %v192_v14  ;;  %v201_v19 = vadd.f32 %v200_v17, %v199_v15 }
  0xd8   : > { %v202_v20 = vmax.f32 %v194_v18, %v201_v19 }
  0xda   : > { %203 = vmax.xlane.f32.xlu0 %v202_v20 }
 0x167   : > { %v204_v21 = vpop.xlane.xlu0 %203 }
 0x168   : > { %v205_v22 = vsub.f32 %v194_v18, %v204_v21  ;;  %v206_v23 = vsub.f32 %v201_v19, %v204_v21 }
 0x16a   : > { %v207_v24 = vmul.f32 1.442695, %v205_v22  ;;  %v209_v25 = vmul.f32 1.442695, %v206_v23 }
 0x16c   : > { %418 = vpow2.f32 %v207_v24 }
 0x16d   : > { %420 = vpow2.f32 %v209_v25 }
 0x176   : > { %v419_v26 = vpop.eup %418 }
 0x177   : > { %v421_v27 = vpop.eup %420 }
 0x178   : > { %v211_v28 = vadd.f32 %v421_v27, %v419_v26 }
 0x17a   : > { %212 = vadd.xlane.f32.xlu1 %v211_v28 }
 0x207   : > { %v213_v29 = vpop.xlane.xlu1 %212 }
 0x208   : > { %422 = vrcp.f32 %v213_v29 }
 0x212   : > { %v423_v30 = vpop.eup %422 }
 0x213   : > { %v215_v31 = vmul.f32 %v423_v30, %v419_v26  ;;  %v216_v32 = vmul.f32 %v423_v30, %v421_v27 }
 0x215   : > { %v219_v33 = vcombine.low %v215_v31, %v216_v32 }
 0x217   : > { %v221_v34 = vmul.f32 %v219_v33, %v173_v1 }
 0x219   : > { %v223_v35 = vcombine.high %v221_v34, %v221_v34  ;;  %v225_v36 = vsel %vm187_vm0, %v221_v34, 0.0 }
 0x21b   : > { %v226_v37 = vsel %vm187_vm0, %v223_v35, 0.0 }
 0x21c   : > { %v227_v38 = vadd.f32 %v226_v37, %v225_v36 }
 0x21e   : > { %228 = vadd.xlane.f32.xlu1 %v227_v38 }
 0x2ab   : > { %v229_v39 = vpop.xlane.xlu1 %228 }
 0x2ac   : > { %v352_v40 = vmul.f32 -1.442695, %v229_v39 }
 0x2ae   : > { %424 = vpow2.f32 %v352_v40 }
 0x2b8   : > { %v425_v41 = vpop.eup %424 }
 0x2b9   : > { %v233_v42 = vadd.f32 1.0, %v425_v41 }
 0x2bb   : > { %426 = vrcp.f32 %v233_v42 }
 0x2c5   : > { %v427_v43 = vpop.eup %426 }
 0x2c6   : > { %v236_v44 = vmul.f32 %v427_v43, %v173_v1  ;;  %v237_v45 = vmul.f32 %v427_v43, %v183_v2 }
 0x2c8   : > { %v240_v46 = vcombine.low %v236_v44, %v237_v45 }
 0x2ca   : > { %242 = vst [vmem:[%s172_s17] sm:$0xff] %v240_v46 }
 0x2cb   : > { %499 = shalt.err (!%p496_p10)
}
 0x2cc   : > { %s500_s6 = scalar_lea.hbm %s741_s29, 128  ;;  %s504_s21 = scalar_lea.hbm %s787_s2, 256 }
 0x2cd   : > { %p501_p1 = scmp.ne.s32.totalorder %s741_s29, %s500_s6  ;;  %p505_p3 = scmp.lt.u32.totalorder %s741_s29, %s787_s2 }
 0x2ce   : > { %p506_p4 = scmp.lt.u32.totalorder %s504_s21, %s500_s6  ;;  %p508_p6 = scmp.lt.u32.totalorder %s500_s6, %s741_s29 }
 0x2cf   : > { %p502_p2 = pnand %p501_p1, %p668_p8 }
 0x2d0   : > { %p507_p11 = por %p506_p4, %p505_p3 }
 0x2d1   : > { %p503_p7 = pneg %p502_p2 }
 0x2d2   : > { %p509_p9 = por %p508_p6, %p507_p11 }
 0x2d4   : > { %p510_p12 = pnand %p509_p9, %p503_p7 }
 0x2d6   : > { %513 = shalt.err (!%p510_p12)
}
 0x2d7   : > { %366 = dma.vmem_to_hbm [thread:$0]  (%p668_p8), %s743_s24, 128, %s741_s29, %s244_s30  }
 0x2d8 PF: > { %s270_s26 = sand.u32 1, %s544_s9   ;;  %p806_p13 = scmp.ne.s32.totalorder %s792_s16, 0 }
 0x2d9   : > { %p807_p0 = scmp.ge.s32.totalorder %s556_s12, 2  ;;  %s271_s23 = scalar_lea.sflag [#allocation4], %s270_s26 }
 0x2db   : > { %p377_p5 = pnand %p807_p0, %p806_p13 }
 0x2dd   : > { %539 = dma.done.wait (!%p377_p5), %s271_s23, 128  }
 0x2de   : > { %541 = vsyncadd (!%p377_p5), %s271_s23, 4294967168  ;;  %p16_p10 = scmp.ge.s32.totalorder %s624_s20, 4   ;;  %s808_s9 = smov %s548_s10 }
 0x2df   : > { %s809_s10 = smov %s552_s11  ;;  %s810_s11 = smov %s660_s8 }
 0x2e0   : > { %s811_s12 = smov %s624_s20  ;;  %18 = sbr.rel (!%p16_p10) target bundleno = 6 (0x6), region = 78 }
 0x2e7   :  { %276 = vsyncpa [#allocation3], 1 }
 0x2e8   :  { %278 = vsyncpa [#allocation3 + $0x1], 1 }
 0x2e9   :  { %279 = vsyncpa [#allocation6], 1 }
 0x2ea   :  { %281 = vsyncpa [#allocation6 + $0x1], 1 }
 0x2eb   :  { %282 = vsyncpa [#allocation4], 1 }
 0x2ec   :  { %284 = vsyncpa [#allocation4 + $0x1], 1 }

</bundles_post_ra>
